<compile_context>
chip_gen: v6e
topology: v6e:2x2x1
jax: 0.10.0
libtpu: 0.0.40
codegen_flags: <defaults>
</compile_context>

<pallas_src>
import functools

import jax
import jax.numpy as jnp
from jax.experimental import pallas as pl
from jax.experimental.pallas import tpu as pltpu


def _logreg_kernel(x_ref, wt_ref, b_ref, o_ref, *, matmul_dtype):
    # x_ref : (TB, In)   VMEM  streaming batch tile
    # wt_ref: (In, Out)  VMEM  pre-transposed, pre-cast weight (resident: constant index_map)
    # b_ref : (1, Out)   VMEM  bias row (f32, resident)
    # o_ref : (TB, Out)  VMEM  output tile (no Out padding -> no extra writeback)
    x = x_ref[...]
    if x.dtype != matmul_dtype:
        x = x.astype(matmul_dtype)  # only the streaming input is cast per tile
    # Plain (TB, In) x (In, Out) MXU matmul, f32 accumulation. No per-step W relayout.
    logits = jnp.dot(x, wt_ref[...], preferred_element_type=jnp.float32)
    o_ref[...] = jax.nn.sigmoid(logits + b_ref[...]).astype(o_ref.dtype)


def _default_vmem_limit_bytes():
    # Generation-aware: ~0.7x physical VMEM (~90 MiB on v5e/v6e, ~45 MiB on v7x),
    # leaving headroom for Mosaic internal scratch.
    try:
        return int(0.7 * pltpu.get_tpu_info().vmem_capacity_bytes)
    except Exception:
        return 48 * 1024 * 1024


def logreg_forward(x, w, b, *, block_batch=1024, matmul_dtype=jnp.float32,
                   vmem_limit_bytes=None):
    """sigmoid(x @ w.T + b) via Pallas.

    x: (B, In); w: (Out, In) in PyTorch nn.Linear layout; b: (Out,).
    """
    B, In = x.shape
    Out, In_w = w.shape
    assert In_w == In, "weight inner dim must match x feature dim"

    if vmem_limit_bytes is None:
        vmem_limit_bytes = _default_vmem_limit_bytes()
    budget = int(0.75 * vmem_limit_bytes)

    # ---- one-time (wrapper-side) weight prep: transpose + cast exactly once ----
    wt = w.T                                   # (In, Out): kernel does a plain matmul
    if wt.dtype != matmul_dtype:
        wt = wt.astype(matmul_dtype)
    b2 = b.reshape(1, Out).astype(jnp.float32)  # bias add / sigmoid stay f32

    x_bytes = jnp.dtype(x.dtype).itemsize
    w_bytes = jnp.dtype(matmul_dtype).itemsize

    def tile_bytes(t):
        # double-buffered x/out tiles + W/b (constant index_map -> resident, but
        # counted x2 since the auto-pipeliner still allocates two buffers).
        # TODO(synk): pipeline_mode=pl.Buffered(1) on the W/b specs would drop the
        # dead second weight buffer once W is large (v7x 64 MiB VMEM).
        return (2 * t * In * x_bytes + 2 * t * Out * 4
                + 2 * In * Out * w_bytes + 2 * Out * 4)

    # ---- batch tile: prefer a multiple of 8 that divides B exactly (no x pad) ----
    cap = min(block_batch, B)
    tb = None
    t = (cap // 8) * 8
    while t >= 8:
        if B % t == 0 and tile_bytes(t) <= budget:
            tb = t
            break
        t -= 8
    if tb is None:
        if B <= block_batch and tile_bytes(B) <= budget:
            tb = B                       # full-extent block: no (8,.) constraint, no pad
        else:
            t = max(8, (cap // 8) * 8)   # minimal-pad fallback for awkward B / huge In
            while t > 8 and tile_bytes(t) > budget:
                t -= 8
            tb = t

    # v7x utilization: with 2 TensorCores a "parallel" batch axis needs >=2 grid
    # steps to shard; the extra ~0.35us step is neutral on v5e/v6e.
    if B // tb <= 1 and B >= 16 and B % 16 == 0:
        tb = B // 2

    grid_b = pl.cdiv(B, tb)
    BP = grid_b * tb
    if BP != B:
        x = jnp.pad(x, ((0, BP - B), (0, 0)))  # rare fallback path only

    kernel = functools.partial(_logreg_kernel, matmul_dtype=matmul_dtype)

    out = pl.pallas_call(
        kernel,
        out_shape=jax.ShapeDtypeStruct((BP, Out), jnp.float32),
        grid_spec=pl.GridSpec(
            grid=(grid_b,),
            in_specs=[
                pl.BlockSpec((tb, In), lambda i: (i, 0)),
                # Constant block index -> W^T and b stay resident in VMEM across the grid.
                pl.BlockSpec((In, Out), lambda i: (0, 0)),
                pl.BlockSpec((1, Out), lambda i: (0, 0)),
            ],
            out_specs=pl.BlockSpec((tb, Out), lambda i: (i, 0)),
        ),
        compiler_params=pltpu.CompilerParams(
            dimension_semantics=("parallel",),   # megacore-shardable batch axis (v7x)
            vmem_limit_bytes=vmem_limit_bytes,
        ),
    )(x, wt, b2)

    return out if BP == B else out[:B]


if __name__ == "__main__":
    key = jax.random.PRNGKey(0)
    k_x, k_w, k_b = jax.random.split(key, 3)

    batch, input_size, output_size = 8, 32, 16

    # Deterministic parameters (mimic nn.Linear init range, fixed by PRNGKey(0)).
    bound = 1.0 / jnp.sqrt(input_size)
    w = jax.random.uniform(k_w, (output_size, input_size), jnp.float32, -bound, bound)
    b = jax.random.uniform(k_b, (output_size,), jnp.float32, -bound, bound)
    x = jax.random.normal(k_x, (batch, input_size), jnp.float32)

    out = logreg_forward(x, w, b)
    jax.block_until_ready(out)

    # High-precision reference; tolerance covers the MXU's multi-pass bf16 lowering
    # of f32 matmuls (generation-dependent), damped further by the sigmoid.
    logits_ref = jnp.dot(x, w.T, precision=jax.lax.Precision.HIGHEST) + b
    ref = jax.nn.sigmoid(logits_ref)
    assert out.shape == (batch, output_size)
    assert jnp.allclose(out, ref, atol=1e-3, rtol=1e-3), float(jnp.max(jnp.abs(out - ref)))
    print("KERNEL_OK")
</pallas_src>

<mosaic_0001>
module attributes {stable_mosaic.version = 11 : i64} {
  func.func @_logreg_kernel(%arg0: i32, %arg1: memref<8x32xf32, #tpu.memory_space<vmem>>, %arg2: memref<32x16xf32, #tpu.memory_space<vmem>>, %arg3: memref<1x16xf32, #tpu.memory_space<vmem>>, %arg4: memref<8x16xf32, #tpu.memory_space<vmem>>) attributes {dimension_semantics = [#tpu.dimension_semantics<parallel>], iteration_bounds = array<i64: 1>, scalar_prefetch = 0 : i64, scratch_operands = 0 : i64, tpu.core_type = #tpu.core_type<tc>, window_params = [{transform_indices = @transform_0, window_bounds = array<i64: 8, 32>}, {pipeline_mode = #tpu.pipeline_mode<synchronous>, transform_indices = @transform_1, window_bounds = array<i64: 32, 16>}, {pipeline_mode = #tpu.pipeline_mode<synchronous>, transform_indices = @transform_2, window_bounds = array<i64: 1, 16>}, {transform_indices = @transform_3, window_bounds = array<i64: 8, 16>}]} {
    %c0 = arith.constant 0 : index
    %c0_0 = arith.constant 0 : index
    %0 = vector.load %arg1[%c0, %c0_0] : memref<8x32xf32, #tpu.memory_space<vmem>>, vector<8x32xf32>
    %c0_1 = arith.constant 0 : index
    %c0_2 = arith.constant 0 : index
    %1 = vector.load %arg2[%c0_1, %c0_2] : memref<32x16xf32, #tpu.memory_space<vmem>>, vector<32x16xf32>
    %cst = arith.constant dense<0.000000e+00> : vector<8x16xf32>
    %2 = tpu.matmul %0, %1, %cst {dimension_numbers = #tpu.dot_dimension_numbers<[1], [0], [0], [1], [0, 0, 1, 1], [], []>} : vector<8x32xf32>, vector<32x16xf32>, vector<8x16xf32> -> vector<8x16xf32>
    %c0_3 = arith.constant 0 : index
    %c0_4 = arith.constant 0 : index
    %3 = vector.load %arg3[%c0_3, %c0_4] : memref<1x16xf32, #tpu.memory_space<vmem>>, vector<1x16xf32>
    %4 = vector.broadcast %3 : vector<1x16xf32> to vector<8x16xf32>
    %5 = arith.addf %2, %4 : vector<8x16xf32>
    %6 = arith.negf %5 : vector<8x16xf32>
    %7 = math.exp %6 : vector<8x16xf32>
    %cst_5 = arith.constant 1.000000e+00 : f32
    %8 = vector.broadcast %cst_5 : f32 to vector<8x16xf32>
    %9 = arith.addf %8, %7 : vector<8x16xf32>
    %10 = arith.divf %8, %9 : vector<8x16xf32>
    %c0_6 = arith.constant 0 : index
    %c0_7 = arith.constant 0 : index
    %11 = vector.load %arg4[%c0_6, %c0_7] : memref<8x16xf32, #tpu.memory_space<vmem>>, vector<8x16xf32>
    tpu.vector_store %arg4[%c0_6, %c0_7], %10 {strides = array<i32>} : memref<8x16xf32, #tpu.memory_space<vmem>>, vector<8x16xf32>,
    return
  }
  func.func @transform_0(%arg0: i32) -> (i32, i32) {
    %c0_i32 = arith.constant 0 : i32
    %c0_i32_0 = arith.constant 0 : i32
    return %arg0, %c0_i32 : i32, i32
  }
  func.func @transform_1(%arg0: i32) -> (i32, i32) {
    %c0_i32 = arith.constant 0 : i32
    %c0_i32_0 = arith.constant 0 : i32
    %c0_i32_1 = arith.constant 0 : i32
    return %c0_i32, %c0_i32_0 : i32, i32
  }
  func.func @transform_2(%arg0: i32) -> (i32, i32) {
    %c0_i32 = arith.constant 0 : i32
    %c0_i32_0 = arith.constant 0 : i32
    %c0_i32_1 = arith.constant 0 : i32
    return %c0_i32, %c0_i32_0 : i32, i32
  }
  func.func @transform_3(%arg0: i32) -> (i32, i32) {
    %c0_i32 = arith.constant 0 : i32
    %c0_i32_0 = arith.constant 0 : i32
    return %arg0, %c0_i32 : i32, i32
  }
}

</mosaic_0001>

<bundles_post_ra>
// kernel: tpu_custom_call.1
= control target key start
LH: loop header
LB: loop body
LE: loop exit
PB: predicated region body
PF: predicated region fallthrough
CT: control target
= control target key end

     0   :  { %v171_v1 = vmov 0.0   ;;  %vm172_vm0 = vmmov 0   ;;  %s215_s0 = inlined_call_operand.vmem [shape: f32[8,32], index: 0, kind: input, shape index: {}]   ;;  %s216_s1 = inlined_call_operand.vmem [shape: f32[32,16], index: 1, kind: input, shape index: {}]   ;;  %s217_s2 = inlined_call_operand.vmem [shape: f32[1,16], index: 2, kind: input, shape index: {}]   ;;  %s218_s3 = inlined_call_operand.hbm [shape: f32[8,16], index: 3, kind: output, shape index: {}]  }
   0x1   :  { %v19_v0 = vld [vmem:[%s216_s1 + $0x18] sm:$0xff]  ;;  %131 = vmatprep.subr.mxu0 %v171_v1  ;;  %v18_v2 = vld [vmem:[%s216_s1 + $0x10] sm:$0xff]  ;;  %139 = vmatprep.mubr.msk.f32.mxu0 %vm172_vm0, %v171_v1 }
   0x2   :  { %132 = vmatpush3.msra.mxu0 %v19_v0 }
   0x3   :  { %8 = vsyncpa [#allocation3], 0  ;;  %133 = vmatprep.subr.mxu0 %v171_v1  ;;  %v17_v3 = vld [vmem:[%s216_s1 + $0x8] sm:$0xff]  ;;  %v16_v4 = vld [vmem:[%s216_s1] sm:$0xff]  ;;  %vm27_vm1 = vcmask 261120   ;;  %s173_s1 = smov [#allocation2]  }
   0x4   :  { %134 = vmatpush3.msra.mxu0 %v18_v2  ;;  %v15_v5 = vld [vmem:[%s215_s0] sm:$0xff]  ;;  %s115_s24 = sshll.u32 %s173_s1, 4  ;;  %vm107_vm2 = vcmask 130048   ;;  %s116_s24 = int_to_ptr.vmem [resolvable:$true] %s115_s24 }
   0x5   :  { %135 = vmatprep.subr.mxu0 %v171_v1  ;;  %v123_v6 = vld [vmem:[%s217_s2] ss:$0 sm:$0xff]  ;;  %s149_s0 = scalar_lea.vmem %s116_s24, 128  ;;  %p154_p1 = scmp.lt.s32.totalorder %s116_s24, %s116_s24 }
   0x6   :  { %136 = vmatpush3.msra.mxu0 %v17_v3  ;;  %p150_p0 = scmp.ne.s32.totalorder %s116_s24, %s149_s0  ;;  %p155_p2 = scmp.lt.s32.totalorder %s149_s0, %s149_s0 }
   0x7   :  { %137 = vmatprep.subr.mxu0 %v171_v1 }
   0x8   :  { %138 = vmatpush3.msra.mxu0 %v16_v4  ;;  %p156_p3 = por %p155_p2, %p154_p1 }
   0x9   :  { %140 = vmatmul.mubr.msk.f32.vlgmr.msra.gmra.mxu0 %vm27_vm1, %v15_v5 }
   0xa   :  { %p157_p4 = pnand %p156_p3, %p150_p0 }
  0xc9   :  { %v97_v7 = vpop.f32.mrf.mxu0 }
  0xca   :  { %v98_v8 = vadd.f32 %v123_v6, %v97_v7 }
  0xcb   :  { %v141_v9 = vpop.f32.mrf.mxu0 }
  0xcc   :  { %v125_v10 = vmul.f32 -1.442695, %v98_v8 }
  0xce   :  { %145 = vpow2.f32 %v125_v10 }
  0xdb   :  { %v146_v11 = vpop.eup %145 }
  0xdc   :  { %v104_v12 = vadd.f32 1.0, %v146_v11 }
  0xde   :  { %147 = vrcp.f32 %v104_v12 }
  0xeb   :  { %v148_v13 = vpop.eup %147 }
  0xec   :  { %108 = vst.msk [vmem:[#allocation2] sm:$0xff] %vm107_vm2, %v148_v13 }
  0xed   :  { %160 = shalt.err (!%p157_p4)
}
  0xee   :  { %118 = dma.vmem_to_hbm [thread:$0]  %s116_s24, 128, %s218_s3, [#allocation3]  }
  0xef   :  { %169 = dma.done.wait [#allocation3], 128  }
  0xf0   :  { %170 = vsyncadd [#allocation3], 4294967168 }
  0xf1   :  { %122 = vsyncpa [#allocation3], 1 }

</bundles_post_ra>
